<compile_context>
chip_gen: v5e
topology: v5e:2x2
jax: 0.10.0
libtpu: 0.0.40
codegen_flags: <defaults>
</compile_context>

<pallas_src>
import math

import jax
import jax.numpy as jnp
from jax.experimental import pallas as pl
from jax.experimental.pallas import tpu as pltpu


def dlm_kernel(xT_ref, w_ref, b_ref, o_ref):
    # xT_ref: (D, TB)  features on sublanes, batch on lanes (lane-dense)
    # w_ref : (D, 1)   resident across the whole grid (index_map -> (0, 0))
    # b_ref : (1, 1)   resident bias
    # o_ref : (1, TB)  lane-dense output -> unmasked vector stores
    x = xT_ref[...].astype(jnp.float32)
    w = w_ref[...]                                        # (D, 1) f32
    # VPU broadcast-multiply + sublane reduce (XLU); no MXU for K=10, N=1.
    acc = jnp.sum(x * w, axis=0, keepdims=True)           # (1, TB) f32
    y = jnp.maximum(acc + b_ref[...], 0.0)                # bias + relu
    # GradientReversal is the identity in the forward pass.
    o_ref[...] = y.astype(o_ref.dtype)


def dlm_forward(x1, x2, w, b, lambda_=1.0, tb_max=2048):
    """Forward of DLM.

    x1: (B, 5), x2: (B, 5), w: (10, 1) input-major Linear weight, b: (1,).
    lambda_ only affects the (unimplemented) backward GRL, so it is unused.
    """
    del lambda_  # GRL forward is identity
    B, d1 = x1.shape
    _, d2 = x2.shape
    D = d1 + d2
    assert w.shape == (D, 1)

    # Lane-dense layout: batch on lanes (last dim), features on sublanes.
    # (concat + transpose here is layout plumbing; XLA fuses it.)
    xT = jnp.concatenate([x1, x2], axis=-1).T              # (D, B)

    # Batch tile: power of two, >= 128 lanes, capped at tb_max.
    tb = int(min(tb_max, max(128, pl.next_power_of_2(B))))
    B_pad = pl.cdiv(B, tb) * tb
    if B_pad != B:
        xT = jnp.pad(xT, ((0, 0), (0, B_pad - B)))

    w_f32 = w.astype(jnp.float32)
    b2d = b.reshape(1, 1).astype(jnp.float32)

    out_t = pl.pallas_call(
        dlm_kernel,
        out_shape=jax.ShapeDtypeStruct((1, B_pad), x1.dtype),
        grid=(B_pad // tb,),
        in_specs=[
            pl.BlockSpec((D, tb), lambda i: (0, i)),       # streamed batch tiles
            pl.BlockSpec((D, 1), lambda i: (0, 0)),        # resident weights
            pl.BlockSpec((1, 1), lambda i: (0, 0)),        # resident bias
        ],
        out_specs=pl.BlockSpec((1, tb), lambda i: (0, i)),
        compiler_params=pltpu.CompilerParams(
            dimension_semantics=("parallel",)),            # megacore on v7x
    )(xT, w_f32, b2d)

    # Drop batch padding, restore (B, 1) row-major output.
    return out_t[:, :B].T


def init_params(key):
    """Deterministic parameter init matching DLM.__init__ / reset_parameters.

    mlp1.weight: (1, 10) xavier_uniform_ ; mlp1.bias: (1,) torch default
    uniform(-1/sqrt(10), 1/sqrt(10)); alpha: (1,) == 1.0 (unused in forward).
    Weight is stored as (in_features, out_features) = (10, 1) for x @ W.
    """
    kw, kb = jax.random.split(key)
    fan_in, fan_out = 10, 1
    bound_w = math.sqrt(6.0 / (fan_in + fan_out))
    w = jax.random.uniform(kw, (10, 1), jnp.float32, -bound_w, bound_w)
    bound_b = 1.0 / math.sqrt(fan_in)
    b = jax.random.uniform(kb, (1,), jnp.float32, -bound_b, bound_b)
    alpha = jnp.ones((1,), jnp.float32)  # unused in forward
    return w, b, alpha


def _reference(x1, x2, w, b):
    return jnp.maximum(jnp.concatenate([x1, x2], -1) @ w + b, 0.0)


# TODO(synk): GRL backward (lambda_-scaled reversed gradient) is not
# implemented; only the forward (identity) pass is translated.

if __name__ == "__main__":
    key = jax.random.PRNGKey(0)
    k1, k2, kp, k3, k4 = jax.random.split(key, 5)

    w, b, alpha = init_params(kp)

    # Small demo shape consistent with Linear(10, 1): two (B, 5) inputs.
    B = 8
    input1 = jax.random.normal(k1, (B, 5), jnp.float32)
    input2 = jax.random.normal(k2, (B, 5), jnp.float32)

    out = dlm_forward(input1, input2, w, b, lambda_=1.0)
    out = jax.block_until_ready(out)
    ref = _reference(input1, input2, w, b)
    assert out.shape == (B, 1)
    assert jnp.allclose(out, ref, atol=1e-5, rtol=1e-5)

    # Also exercise the multi-tile grid + padding path (B not a tile multiple).
    B2 = 384
    a1 = jax.random.normal(k3, (B2, 5), jnp.float32)
    a2 = jax.random.normal(k4, (B2, 5), jnp.float32)
    out2 = jax.block_until_ready(dlm_forward(a1, a2, w, b, tb_max=128))
    assert out2.shape == (B2, 1)
    assert jnp.allclose(out2, _reference(a1, a2, w, b), atol=1e-5, rtol=1e-5)

    print("KERNEL_OK")
</pallas_src>

<mosaic_0001>
module attributes {stable_mosaic.version = 11 : i64} {
  func.func @dlm_kernel(%arg0: i32, %arg1: memref<10x128xf32, #tpu.memory_space<vmem>>, %arg2: memref<10x1xf32, #tpu.memory_space<vmem>>, %arg3: memref<1x1xf32, #tpu.memory_space<vmem>>, %arg4: memref<1x128xf32, #tpu.memory_space<vmem>>) attributes {dimension_semantics = [#tpu.dimension_semantics<parallel>], iteration_bounds = array<i64: 1>, scalar_prefetch = 0 : i64, scratch_operands = 0 : i64, tpu.core_type = #tpu.core_type<tc>, window_params = [{transform_indices = @transform_0, window_bounds = array<i64: 10, 128>}, {pipeline_mode = #tpu.pipeline_mode<synchronous>, transform_indices = @transform_1, window_bounds = array<i64: 10, 1>}, {pipeline_mode = #tpu.pipeline_mode<synchronous>, transform_indices = @transform_2, window_bounds = array<i64: 1, 1>}, {transform_indices = @transform_3, window_bounds = array<i64: 1, 128>}]} {
    %c0 = arith.constant 0 : index
    %c0_0 = arith.constant 0 : index
    %0 = vector.load %arg1[%c0, %c0_0] : memref<10x128xf32, #tpu.memory_space<vmem>>, vector<10x128xf32>
    %c0_1 = arith.constant 0 : index
    %c0_2 = arith.constant 0 : index
    %1 = vector.load %arg2[%c0_1, %c0_2] : memref<10x1xf32, #tpu.memory_space<vmem>>, vector<10x1xf32>
    %2 = vector.broadcast %1 : vector<10x1xf32> to vector<10x128xf32>
    %3 = arith.mulf %0, %2 : vector<10x128xf32>
    %cst = arith.constant dense<0.000000e+00> : vector<128xf32>
    %4 = vector.multi_reduction <add>, %3, %cst [0] : vector<10x128xf32> to vector<128xf32>
    %5 = vector.shape_cast %4 : vector<128xf32> to vector<1x128xf32>
    %c0_3 = arith.constant 0 : index
    %c0_4 = arith.constant 0 : index
    %6 = vector.load %arg3[%c0_3, %c0_4] : memref<1x1xf32, #tpu.memory_space<vmem>>, vector<1x1xf32>
    %7 = vector.broadcast %6 : vector<1x1xf32> to vector<1x128xf32>
    %8 = arith.addf %5, %7 : vector<1x128xf32>
    %cst_5 = arith.constant 0.000000e+00 : f32
    %9 = vector.broadcast %cst_5 : f32 to vector<1x128xf32>
    %10 = arith.maximumf %8, %9 : vector<1x128xf32>
    %c0_6 = arith.constant 0 : index
    %c0_7 = arith.constant 0 : index
    %11 = vector.load %arg4[%c0_6, %c0_7] : memref<1x128xf32, #tpu.memory_space<vmem>>, vector<1x128xf32>
    tpu.vector_store %arg4[%c0_6, %c0_7], %10 {strides = array<i32>} : memref<1x128xf32, #tpu.memory_space<vmem>>, vector<1x128xf32>,
    return
  }
  func.func @transform_0(%arg0: i32) -> (i32, i32) {
    %c0_i32 = arith.constant 0 : i32
    %c0_i32_0 = arith.constant 0 : i32
    return %c0_i32, %arg0 : i32, i32
  }
  func.func @transform_1(%arg0: i32) -> (i32, i32) {
    %c0_i32 = arith.constant 0 : i32
    %c0_i32_0 = arith.constant 0 : i32
    %c0_i32_1 = arith.constant 0 : i32
    return %c0_i32, %c0_i32_0 : i32, i32
  }
  func.func @transform_2(%arg0: i32) -> (i32, i32) {
    %c0_i32 = arith.constant 0 : i32
    %c0_i32_0 = arith.constant 0 : i32
    %c0_i32_1 = arith.constant 0 : i32
    return %c0_i32, %c0_i32_0 : i32, i32
  }
  func.func @transform_3(%arg0: i32) -> (i32, i32) {
    %c0_i32 = arith.constant 0 : i32
    %c0_i32_0 = arith.constant 0 : i32
    return %c0_i32, %arg0 : i32, i32
  }
}

</mosaic_0001>

<bundles_post_ra>
// kernel: tpu_custom_call.1
= control target key start
LH: loop header
LB: loop body
LE: loop exit
PB: predicated region body
PF: predicated region fallthrough
CT: control target
= control target key end

     0   :  { %s138_s0 = inlined_call_operand.vmem [shape: f32[10,128], index: 0, kind: input, shape index: {}]   ;;  %s139_s1 = inlined_call_operand.vmem [shape: f32[10,1], index: 1, kind: input, shape index: {}]   ;;  %s140_s2 = inlined_call_operand.<no memory space> [shape: f32[1,1], index: 2, kind: input, shape index: {}]   ;;  %s141_s3 = inlined_call_operand.hbm [shape: f32[1,128], index: 3, kind: output, shape index: {}]  }
   0x1   :  { %v8_v0 = vstv %s140_s2 }
   0x2   :  { %9 = vst [vmem:[#allocation2] sm:$0x1] %v8_v0 }
   0x3   :  { %v20_v1 = vld [vmem:[%s139_s1 + $0x8] sm:$0x3]  ;;  %v98_v3 = vmov 0  }
   0x4   :  { %70 = vset.pattern.permute.xlu0 %v98_v3  ;;  %71 = vset.pattern.permute.xlu1 %v98_v3 }
   0x9   :  { %v42_v2 = vld [vmem:[#allocation2] sm:$0x1] }
   0xa   :  { %10 = vsyncpa [#allocation4], 0  ;;  %28 = vperm.xlu0 %70, %v20_v1   ;;  %45 = vperm.xlu1 %71, %v42_v2   ;;  %v19_v4 = vld [vmem:[%s139_s1] sm:$0xff]  ;;  %v18_v6 = vld [vmem:[%s138_s0 + $0x8] sm:$0x3]  ;;  %vm33_vm0 = vcmask 1041408  }
   0xb   :  { %v17_v8 = vld [vmem:[%s138_s0] sm:$0xff]  ;;  %s99_s1 = smov [#allocation3]   ;;  %s59_s24 = sshll.u32 %s141_s3, 4  ;;  %s60_s24 = int_to_ptr.hbm [resolvable:$true] %s59_s24 }
   0xc   :  { %s57_s21 = sshll.u32 %s99_s1, 4  ;;  %s58_s21 = int_to_ptr.vmem [resolvable:$true] %s57_s21 }
  0x12   :  { %23 = vperm.xlu0 %70, %v19_v4  }
  0x7c   :  { %v29_v5 = vpop.permute.xlu0 %28  ;;  %v46_v16 = vpop.permute.xlu1 %45 }
  0x7d   :  { %v32_v7 = vmul.f32 %v29_v5, %v18_v6  ;;  %v48_v19 = vperm.slane %v46_v16, 0 }
  0x7f   :  { %v34_v11 = vsel %vm33_vm0, %v32_v7, 0.0 }
  0x84   :  { %v24_v9 = vpop.permute.xlu0 %23 }
  0x85   :  { %v31_v10 = vmul.f32 %v24_v9, %v17_v8 }
  0x87   :  { %v35_v12 = vadd.f32 %v34_v11, %v31_v10 }
  0x89   :  { %v36_v13 = vrot.slane %v35_v12, 4 }
  0x8b   :  { %v37_v14 = vadd.f32 %v36_v13, %v35_v12 }
  0x8d   :  { %v38_v15 = vrot.slane %v37_v14, 2 }
  0x8f   :  { %v39_v17 = vadd.f32 %v38_v15, %v37_v14 }
  0x91   :  { %v40_v18 = vrot.slane %v39_v17, 1 }
  0x93   :  { %v41_v20 = vadd.f32 %v40_v18, %v39_v17 }
  0x95   :  { %v49_v21 = vadd.f32 %v48_v19, %v41_v20 }
  0x97   :  { %v50_v22 = vmax.f32 %v49_v21, 0.0 }
  0x99   :  { %51 = vst [vmem:[#allocation3] sm:$0x1] %v50_v22 }
  0x9a   :  { %62 = dma.vmem_to_hbm [thread:$0]  %s58_s21, 16, %s60_s24, [#allocation4]  }
  0x9b   :  { %96 = dma.done.wait [#allocation4], 16  }
  0x9c   :  { %97 = vsyncadd [#allocation4], 4294967280 }
  0x9d   :  { %67 = vsyncpa [#allocation4], 1 }

</bundles_post_ra>
